<compile_context>
chip_gen: v6e
topology: v6e:2x2x1
jax: 0.10.0
libtpu: 0.0.40
codegen_flags: <defaults>
</compile_context>

<pallas_src>
import functools

import jax
import jax.numpy as jnp
from jax.experimental import pallas as pl
from jax.experimental.pallas import tpu as pltpu


# ----------------------------------------------------------------------------
# Kernel 1: backbone stand-in, one frame per grid step.
# ----------------------------------------------------------------------------
def _backbone_kernel(x_ref, cwT_ref, cb_ref, fwT_ref, fb_ref, o_ref, *, hw):
    # x_ref  : (1, C, HW)  bf16  lane-dense pixels of one frame
    # cwT_ref: (CMID, C)   bf16  pointwise-conv weight (transposed)
    # cb_ref : (CMID, 1)   f32
    # fwT_ref: (P, CMID)   bf16  backbone FC weight (transposed)
    # fb_ref : (P, 1)      f32
    # o_ref  : (1, P, 1)   f32   per-frame feature column
    f32 = jnp.float32

    x = x_ref[0]                                                    # (C, HW)
    hT = jnp.dot(cwT_ref[...], x, preferred_element_type=f32)       # (CMID, HW)
    hT = jnp.maximum(hT + cb_ref[...], 0.0)

    # Global average pool = cross-lane reduction (XLU); no pool matrix.
    pooled = jnp.sum(hT, axis=1, keepdims=True) * (1.0 / hw)        # (CMID, 1)

    featsT = jnp.dot(fwT_ref[...], pooled.astype(jnp.bfloat16),
                     preferred_element_type=f32) + fb_ref[...]      # (P, 1)
    featsT = jnp.maximum(featsT, 0.0)
    o_ref[...] = featsT.reshape(o_ref.shape)


# ----------------------------------------------------------------------------
# Kernel 2: LSTM + compare_fc + predict_mlp head (all tiny, single step).
# ----------------------------------------------------------------------------
def _head_kernel(
    feat_ref,    # (F, P)      f32  per-frame features (frame-major: s, b)
    wih_ref,     # (P, 4*HU)   bf16 LSTM input->gates
    whh_ref,     # (HU, 4*HU)  bf16 LSTM hidden->gates
    lb_ref,      # (1, 4*HU)   f32  LSTM bias (b_ih + b_hh)
    cmpwa_ref,   # (P, HU)     bf16 compare_fc weight, rows [:P]
    cmpwb_ref,   # (P, HU)     bf16 compare_fc weight, rows [P:]
    cmpb_ref,    # (1, HU)     f32
    w1l_ref,     # (HU, 100)   bf16 predict_mlp layer-1, lstm half
    w1c_ref,     # (HU, 100)   bf16 predict_mlp layer-1, cmp half
    b1_ref,      # (1, 100)    f32
    w2_ref,      # (100, 2)    bf16 predict_mlp layer-2
    b2_ref,      # (1, 2)      f32
    o_ref,       # (2, T*B, 2) f32  [0]=positive branch, [1]=negative branch
    *, batch, steps, hidden,
):
    f32 = jnp.float32
    bf16 = jnp.bfloat16
    T = steps - 2
    tb = T * batch

    feats_bf = feat_ref[...].astype(bf16)                     # (F, P)

    # ---------------- LSTM over frames 0..T-1 --------------------------------
    # Input->gate matmul hoisted out of the recurrence (one (T*B,P)@(P,4HU)).
    gates_ih = (jnp.dot(feats_bf[:tb], wih_ref[...], preferred_element_type=f32)
                + lb_ref[...])                                 # (T*B, 4*HU)
    w_hh = whh_ref[...]
    hh = jnp.zeros((batch, hidden), f32)
    cc = jnp.zeros((batch, hidden), f32)
    hs = []
    for t in range(T):                                         # T is tiny
        g = gates_ih[t * batch:(t + 1) * batch] + jnp.dot(
            hh.astype(bf16), w_hh, preferred_element_type=f32)  # (B, 4*HU)
        sg = jax.nn.sigmoid(g)                                  # full-slab EUP
        tg = jnp.tanh(g)                                        # full-slab EUP
        i_g = sg[:, 0 * hidden:1 * hidden]
        f_g = sg[:, 1 * hidden:2 * hidden]
        g_g = tg[:, 2 * hidden:3 * hidden]
        o_g = sg[:, 3 * hidden:4 * hidden]
        cc = f_g * cc + i_g * g_g
        hh = o_g * jnp.tanh(cc)
        hs.append(hh)
    lstm_slab = jnp.concatenate(hs, axis=0)                    # (T*B, HU)

    # ---------------- compare_fc via split weights (no lane concats) ---------
    rows_mid = feats_bf[batch:(1 + T) * batch]                 # frames 1..T
    rows_last = feats_bf[2 * batch:(2 + T) * batch]            # frames 2..T+1
    wa = cmpwa_ref[...]
    wb = cmpwb_ref[...]
    mid_a = jnp.dot(rows_mid, wa, preferred_element_type=f32)
    mid_b = jnp.dot(rows_mid, wb, preferred_element_type=f32)
    last_a = jnp.dot(rows_last, wa, preferred_element_type=f32)
    last_b = jnp.dot(rows_last, wb, preferred_element_type=f32)
    cmp_p = jnp.maximum(mid_a + last_b + cmpb_ref[...], 0.0)   # (T*B, HU)
    cmp_n = jnp.maximum(last_a + mid_b + cmpb_ref[...], 0.0)

    # ---------------- predict_mlp with split layer-1 weight ------------------
    h_lstm = jnp.dot(lstm_slab.astype(bf16), w1l_ref[...],
                     preferred_element_type=f32)               # shared by p/n
    w1c = w1c_ref[...]
    h1_p = jnp.maximum(h_lstm + jnp.dot(cmp_p.astype(bf16), w1c,
                                        preferred_element_type=f32)
                       + b1_ref[...], 0.0)
    h1_n = jnp.maximum(h_lstm + jnp.dot(cmp_n.astype(bf16), w1c,
                                        preferred_element_type=f32)
                       + b1_ref[...], 0.0)

    w2 = w2_ref[...]
    pred_p = jnp.dot(h1_p.astype(bf16), w2, preferred_element_type=f32) + b2_ref[...]
    pred_n = jnp.dot(h1_n.astype(bf16), w2, preferred_element_type=f32) + b2_ref[...]

    o_ref[0:1, :, :] = pred_p.reshape(1, tb, 2).astype(o_ref.dtype)
    o_ref[1:2, :, :] = pred_n.reshape(1, tb, 2).astype(o_ref.dtype)


def _full_block(shape):
    zeros = (0,) * len(shape)
    return pl.BlockSpec(shape, lambda i, _z=zeros: _z)


# ----------------------------------------------------------------------------
# FramePredict.forward (task == 'order')
# ----------------------------------------------------------------------------
def frame_predict_forward(frames, params):
    S, B, C, H, W = frames.shape
    CMID = params["conv_w"].shape[1]
    P = params["feat_w"].shape[1]
    HU = params["lstm_w_hh"].shape[0]
    T = S - 2
    F = S * B
    HW = H * W

    f32 = jnp.float32
    bf16 = jnp.bfloat16

    # ---- backbone stand-in (time_distributed): gridded over frames ---------
    x3d = frames.reshape(F, C, HW).astype(bf16)            # lane-dense pixels
    cwT = params["conv_w"].T.astype(bf16)                  # (CMID, C)
    cb_col = params["conv_b"].reshape(-1, 1).astype(f32)   # (CMID, 1)
    fwT = params["feat_w"].T.astype(bf16)                  # (P, CMID)
    fb_col = params["feat_b"].reshape(-1, 1).astype(f32)   # (P, 1)

    feats = pl.pallas_call(
        functools.partial(_backbone_kernel, hw=HW),
        out_shape=jax.ShapeDtypeStruct((F, P, 1), f32),
        grid=(F,),
        in_specs=[
            pl.BlockSpec((1, C, HW), lambda f: (f, 0, 0)),
            pl.BlockSpec((CMID, C), lambda f: (0, 0)),
            pl.BlockSpec((CMID, 1), lambda f: (0, 0)),
            pl.BlockSpec((P, CMID), lambda f: (0, 0)),
            pl.BlockSpec((P, 1), lambda f: (0, 0)),
        ],
        out_specs=pl.BlockSpec((1, P, 1), lambda f: (f, 0, 0)),
        compiler_params=pltpu.CompilerParams(
            dimension_semantics=("parallel",)),   # 2 TCs on v7x
    )(x3d, cwT, cb_col, fwT, fb_col)
    feats2d = feats.reshape(F, P)                           # (S*B, P), (s, b) rows

    # ---- LSTM + compare_fc + predict_mlp head -------------------------------
    lstm_b = (params["lstm_b_ih"] + params["lstm_b_hh"]).reshape(1, 4 * HU).astype(f32)
    wih = params["lstm_w_ih"].astype(bf16)
    whh = params["lstm_w_hh"].astype(bf16)
    cmpwa = params["cmp_w"][:P].astype(bf16)
    cmpwb = params["cmp_w"][P:].astype(bf16)
    cmpb = params["cmp_b"].reshape(1, -1).astype(f32)
    w1l = params["mlp_w1"][:HU].astype(bf16)
    w1c = params["mlp_w1"][HU:].astype(bf16)
    b1 = params["mlp_b1"].reshape(1, -1).astype(f32)
    w2 = params["mlp_w2"].astype(bf16)
    b2 = params["mlp_b2"].reshape(1, -1).astype(f32)

    head_inputs = (feats2d, wih, whh, lstm_b, cmpwa, cmpwb, cmpb,
                   w1l, w1c, b1, w2, b2)

    out = pl.pallas_call(
        functools.partial(_head_kernel, batch=B, steps=S, hidden=HU),
        out_shape=jax.ShapeDtypeStruct((2, T * B, 2), f32),
        grid=(1,),
        in_specs=[_full_block(a.shape) for a in head_inputs],
        out_specs=_full_block((2, T * B, 2)),
        compiler_params=pltpu.CompilerParams(dimension_semantics=("arbitrary",)),
    )(*head_inputs)

    # (branch, t*B+b, 2) -> (T, B*2, 2) matching PyTorch's p/n interleave.
    predictions = jnp.transpose(out.reshape(2, T, B, 2), (1, 2, 0, 3)).reshape(T, B * 2, 2)
    labels = jnp.tile(jnp.array([1, 0], dtype=jnp.int32), (T, B, 1)).reshape(T, B * 2)
    return predictions, labels


# ----------------------------------------------------------------------------
# Parameter construction (deterministic, in-script; independent keys per param)
# ----------------------------------------------------------------------------
def init_params(key, *, c, cmid, in_planes, lstm_units):
    ks = jax.random.split(key, 14)
    s = 0.05

    def rn(k, shape):
        return (s * jax.random.normal(k, shape)).astype(jnp.float32)

    return {
        # backbone stand-in
        "conv_w": rn(ks[0], (c, cmid)),
        "conv_b": rn(ks[1], (cmid,)),
        "feat_w": rn(ks[2], (cmid, in_planes)),
        "feat_b": rn(ks[3], (in_planes,)),
        # nn.LSTM(in_planes, lstm_units): gate order (i,f,g,o), two biases
        "lstm_w_ih": rn(ks[4], (in_planes, 4 * lstm_units)),
        "lstm_w_hh": rn(ks[5], (lstm_units, 4 * lstm_units)),
        "lstm_b_ih": rn(ks[6], (4 * lstm_units,)),
        "lstm_b_hh": rn(ks[7], (4 * lstm_units,)),
        # compare_fc: Linear(2*in_planes, lstm_units) + ReLU
        "cmp_w": rn(ks[8], (2 * in_planes, lstm_units)),
        "cmp_b": rn(ks[9], (lstm_units,)),
        # predict_mlp: Linear(2*lstm_units, 100) + ReLU + Linear(100, 2)
        "mlp_w1": rn(ks[10], (2 * lstm_units, 100)),
        "mlp_b1": rn(ks[11], (100,)),
        "mlp_w2": rn(ks[12], (100, 2)),
        "mlp_b2": rn(ks[13], (2,)),
    }


if __name__ == "__main__":
    S, B, C, HWS = 5, 2, 4, 16           # steps, batch, channels, spatial
    CMID, IN_PLANES, LSTM_UNITS = 16, 64, 32

    key = jax.random.PRNGKey(0)
    k_frames, k_params = jax.random.split(key)
    frames = jax.random.normal(k_frames, (S, B, C, HWS, HWS), dtype=jnp.float32)
    params = init_params(
        k_params, c=C, cmid=CMID, in_planes=IN_PLANES, lstm_units=LSTM_UNITS
    )

    fwd = jax.jit(frame_predict_forward)
    preds, labels = fwd(frames, params)
    jax.block_until_ready((preds, labels))

    assert preds.shape == (S - 2, B * 2, 2)
    assert labels.shape == (S - 2, B * 2)
    print("KERNEL_OK")
</pallas_src>

<mosaic_0001>
module attributes {stable_mosaic.version = 11 : i64} {
  func.func @_head_kernel(%arg0: i32, %arg1: memref<10x64xf32, #tpu.memory_space<vmem>>, %arg2: memref<64x128xbf16, #tpu.memory_space<vmem>>, %arg3: memref<32x128xbf16, #tpu.memory_space<vmem>>, %arg4: memref<1x128xf32, #tpu.memory_space<vmem>>, %arg5: memref<64x32xbf16, #tpu.memory_space<vmem>>, %arg6: memref<64x32xbf16, #tpu.memory_space<vmem>>, %arg7: memref<1x32xf32, #tpu.memory_space<vmem>>, %arg8: memref<32x100xbf16, #tpu.memory_space<vmem>>, %arg9: memref<32x100xbf16, #tpu.memory_space<vmem>>, %arg10: memref<1x100xf32, #tpu.memory_space<vmem>>, %arg11: memref<100x2xbf16, #tpu.memory_space<vmem>>, %arg12: memref<1x2xf32, #tpu.memory_space<vmem>>, %arg13: memref<2x6x2xf32, #tpu.memory_space<vmem>>) attributes {dimension_semantics = [#tpu.dimension_semantics<arbitrary>], iteration_bounds = array<i64: 1>, scalar_prefetch = 0 : i64, scratch_operands = 0 : i64, tpu.core_type = #tpu.core_type<tc>, window_params = [{pipeline_mode = #tpu.pipeline_mode<synchronous>, transform_indices = @transform_0, window_bounds = array<i64: 10, 64>}, {pipeline_mode = #tpu.pipeline_mode<synchronous>, transform_indices = @transform_1, window_bounds = array<i64: 64, 128>}, {pipeline_mode = #tpu.pipeline_mode<synchronous>, transform_indices = @transform_2, window_bounds = array<i64: 32, 128>}, {pipeline_mode = #tpu.pipeline_mode<synchronous>, transform_indices = @transform_3, window_bounds = array<i64: 1, 128>}, {pipeline_mode = #tpu.pipeline_mode<synchronous>, transform_indices = @transform_4, window_bounds = array<i64: 64, 32>}, {pipeline_mode = #tpu.pipeline_mode<synchronous>, transform_indices = @transform_5, window_bounds = array<i64: 64, 32>}, {pipeline_mode = #tpu.pipeline_mode<synchronous>, transform_indices = @transform_6, window_bounds = array<i64: 1, 32>}, {pipeline_mode = #tpu.pipeline_mode<synchronous>, transform_indices = @transform_7, window_bounds = array<i64: 32, 100>}, {pipeline_mode = #tpu.pipeline_mode<synchronous>, transform_indices = @transform_8, window_bounds = array<i64: 32, 100>}, {pipeline_mode = #tpu.pipeline_mode<synchronous>, transform_indices = @transform_9, window_bounds = array<i64: 1, 100>}, {pipeline_mode = #tpu.pipeline_mode<synchronous>, transform_indices = @transform_10, window_bounds = array<i64: 100, 2>}, {pipeline_mode = #tpu.pipeline_mode<synchronous>, transform_indices = @transform_11, window_bounds = array<i64: 1, 2>}, {pipeline_mode = #tpu.pipeline_mode<synchronous>, transform_indices = @transform_12, window_bounds = array<i64: 2, 6, 2>}]} {
    %c0 = arith.constant 0 : index
    %c0_0 = arith.constant 0 : index
    %0 = vector.load %arg1[%c0, %c0_0] : memref<10x64xf32, #tpu.memory_space<vmem>>, vector<10x64xf32>
    %1 = arith.truncf %0 : vector<10x64xf32> to vector<10x64xbf16>
    %2 = vector.extract_strided_slice %1 {offsets = [0, 0], sizes = [6, 64], strides = [1, 1]} : vector<10x64xbf16> to vector<6x64xbf16>
    %c0_1 = arith.constant 0 : index
    %c0_2 = arith.constant 0 : index
    %3 = vector.load %arg2[%c0_1, %c0_2] : memref<64x128xbf16, #tpu.memory_space<vmem>>, vector<64x128xbf16>
    %cst = arith.constant dense<0.000000e+00> : vector<6x128xf32>
    %4 = tpu.matmul %2, %3, %cst {dimension_numbers = #tpu.dot_dimension_numbers<[1], [0], [0], [1], [0, 0, 1, 1], [], []>} : vector<6x64xbf16>, vector<64x128xbf16>, vector<6x128xf32> -> vector<6x128xf32>
    %c0_3 = arith.constant 0 : index
    %c0_4 = arith.constant 0 : index
    %5 = vector.load %arg4[%c0_3, %c0_4] : memref<1x128xf32, #tpu.memory_space<vmem>>, vector<1x128xf32>
    %6 = vector.broadcast %5 : vector<1x128xf32> to vector<6x128xf32>
    %7 = arith.addf %4, %6 : vector<6x128xf32>
    %c0_5 = arith.constant 0 : index
    %c0_6 = arith.constant 0 : index
    %8 = vector.load %arg3[%c0_5, %c0_6] : memref<32x128xbf16, #tpu.memory_space<vmem>>, vector<32x128xbf16>
    %cst_7 = arith.constant 0.000000e+00 : f32
    %9 = vector.broadcast %cst_7 : f32 to vector<2x32xf32>
    %cst_8 = arith.constant 0.000000e+00 : f32
    %10 = vector.broadcast %cst_8 : f32 to vector<2x32xf32>
    %11 = vector.extract_strided_slice %7 {offsets = [0, 0], sizes = [2, 128], strides = [1, 1]} : vector<6x128xf32> to vector<2x128xf32>
    %12 = arith.truncf %9 : vector<2x32xf32> to vector<2x32xbf16>
    %cst_9 = arith.constant dense<0.000000e+00> : vector<2x128xf32>
    %13 = tpu.matmul %12, %8, %cst_9 {dimension_numbers = #tpu.dot_dimension_numbers<[1], [0], [0], [1], [0, 0, 1, 1], [], []>} : vector<2x32xbf16>, vector<32x128xbf16>, vector<2x128xf32> -> vector<2x128xf32>
    %14 = arith.addf %11, %13 : vector<2x128xf32>
    %15 = arith.negf %14 : vector<2x128xf32>
    %16 = math.exp %15 : vector<2x128xf32>
    %cst_10 = arith.constant 1.000000e+00 : f32
    %17 = vector.broadcast %cst_10 : f32 to vector<2x128xf32>
    %18 = arith.addf %17, %16 : vector<2x128xf32>
    %19 = arith.divf %17, %18 : vector<2x128xf32>
    %20 = math.tanh %14 : vector<2x128xf32>
    %21 = vector.extract_strided_slice %19 {offsets = [0, 0], sizes = [2, 32], strides = [1, 1]} : vector<2x128xf32> to vector<2x32xf32>
    %22 = vector.extract_strided_slice %19 {offsets = [0, 32], sizes = [2, 32], strides = [1, 1]} : vector<2x128xf32> to vector<2x32xf32>
    %23 = vector.extract_strided_slice %20 {offsets = [0, 64], sizes = [2, 32], strides = [1, 1]} : vector<2x128xf32> to vector<2x32xf32>
    %24 = vector.extract_strided_slice %19 {offsets = [0, 96], sizes = [2, 32], strides = [1, 1]} : vector<2x128xf32> to vector<2x32xf32>
    %25 = arith.mulf %22, %10 : vector<2x32xf32>
    %26 = arith.mulf %21, %23 : vector<2x32xf32>
    %27 = arith.addf %25, %26 : vector<2x32xf32>
    %28 = math.tanh %27 : vector<2x32xf32>
    %29 = arith.mulf %24, %28 : vector<2x32xf32>
    %30 = vector.extract_strided_slice %7 {offsets = [2, 0], sizes = [2, 128], strides = [1, 1]} : vector<6x128xf32> to vector<2x128xf32>
    %31 = arith.truncf %29 : vector<2x32xf32> to vector<2x32xbf16>
    %cst_11 = arith.constant dense<0.000000e+00> : vector<2x128xf32>
    %32 = tpu.matmul %31, %8, %cst_11 {dimension_numbers = #tpu.dot_dimension_numbers<[1], [0], [0], [1], [0, 0, 1, 1], [], []>} : vector<2x32xbf16>, vector<32x128xbf16>, vector<2x128xf32> -> vector<2x128xf32>
    %33 = arith.addf %30, %32 : vector<2x128xf32>
    %34 = arith.negf %33 : vector<2x128xf32>
    %35 = math.exp %34 : vector<2x128xf32>
    %cst_12 = arith.constant 1.000000e+00 : f32
    %36 = vector.broadcast %cst_12 : f32 to vector<2x128xf32>
    %37 = arith.addf %36, %35 : vector<2x128xf32>
    %38 = arith.divf %36, %37 : vector<2x128xf32>
    %39 = math.tanh %33 : vector<2x128xf32>
    %40 = vector.extract_strided_slice %38 {offsets = [0, 0], sizes = [2, 32], strides = [1, 1]} : vector<2x128xf32> to vector<2x32xf32>
    %41 = vector.extract_strided_slice %38 {offsets = [0, 32], sizes = [2, 32], strides = [1, 1]} : vector<2x128xf32> to vector<2x32xf32>
    %42 = vector.extract_strided_slice %39 {offsets = [0, 64], sizes = [2, 32], strides = [1, 1]} : vector<2x128xf32> to vector<2x32xf32>
    %43 = vector.extract_strided_slice %38 {offsets = [0, 96], sizes = [2, 32], strides = [1, 1]} : vector<2x128xf32> to vector<2x32xf32>
    %44 = arith.mulf %41, %27 : vector<2x32xf32>
    %45 = arith.mulf %40, %42 : vector<2x32xf32>
    %46 = arith.addf %44, %45 : vector<2x32xf32>
    %47 = math.tanh %46 : vector<2x32xf32>
    %48 = arith.mulf %43, %47 : vector<2x32xf32>
    %49 = vector.extract_strided_slice %7 {offsets = [4, 0], sizes = [2, 128], strides = [1, 1]} : vector<6x128xf32> to vector<2x128xf32>
    %50 = arith.truncf %48 : vector<2x32xf32> to vector<2x32xbf16>
    %cst_13 = arith.constant dense<0.000000e+00> : vector<2x128xf32>
    %51 = tpu.matmul %50, %8, %cst_13 {dimension_numbers = #tpu.dot_dimension_numbers<[1], [0], [0], [1], [0, 0, 1, 1], [], []>} : vector<2x32xbf16>, vector<32x128xbf16>, vector<2x128xf32> -> vector<2x128xf32>
    %52 = arith.addf %49, %51 : vector<2x128xf32>
    %53 = arith.negf %52 : vector<2x128xf32>
    %54 = math.exp %53 : vector<2x128xf32>
    %cst_14 = arith.constant 1.000000e+00 : f32
    %55 = vector.broadcast %cst_14 : f32 to vector<2x128xf32>
    %56 = arith.addf %55, %54 : vector<2x128xf32>
    %57 = arith.divf %55, %56 : vector<2x128xf32>
    %58 = math.tanh %52 : vector<2x128xf32>
    %59 = vector.extract_strided_slice %57 {offsets = [0, 0], sizes = [2, 32], strides = [1, 1]} : vector<2x128xf32> to vector<2x32xf32>
    %60 = vector.extract_strided_slice %57 {offsets = [0, 32], sizes = [2, 32], strides = [1, 1]} : vector<2x128xf32> to vector<2x32xf32>
    %61 = vector.extract_strided_slice %58 {offsets = [0, 64], sizes = [2, 32], strides = [1, 1]} : vector<2x128xf32> to vector<2x32xf32>
    %62 = vector.extract_strided_slice %57 {offsets = [0, 96], sizes = [2, 32], strides = [1, 1]} : vector<2x128xf32> to vector<2x32xf32>
    %63 = arith.mulf %60, %46 : vector<2x32xf32>
    %64 = arith.mulf %59, %61 : vector<2x32xf32>
    %65 = arith.addf %63, %64 : vector<2x32xf32>
    %66 = math.tanh %65 : vector<2x32xf32>
    %67 = arith.mulf %62, %66 : vector<2x32xf32>
    %68 = tpu.concatenate %29, %48, %67 in 0 : vector<2x32xf32>, vector<2x32xf32>, vector<2x32xf32> -> vector<6x32xf32>
    %69 = vector.extract_strided_slice %1 {offsets = [2, 0], sizes = [6, 64], strides = [1, 1]} : vector<10x64xbf16> to vector<6x64xbf16>
    %70 = vector.extract_strided_slice %1 {offsets = [4, 0], sizes = [6, 64], strides = [1, 1]} : vector<10x64xbf16> to vector<6x64xbf16>
    %c0_15 = arith.constant 0 : index
    %c0_16 = arith.constant 0 : index
    %71 = vector.load %arg5[%c0_15, %c0_16] : memref<64x32xbf16, #tpu.memory_space<vmem>>, vector<64x32xbf16>
    %c0_17 = arith.constant 0 : index
    %c0_18 = arith.constant 0 : index
    %72 = vector.load %arg6[%c0_17, %c0_18] : memref<64x32xbf16, #tpu.memory_space<vmem>>, vector<64x32xbf16>
    %cst_19 = arith.constant dense<0.000000e+00> : vector<6x32xf32>
    %73 = tpu.matmul %69, %71, %cst_19 {dimension_numbers = #tpu.dot_dimension_numbers<[1], [0], [0], [1], [0, 0, 1, 1], [], []>} : vector<6x64xbf16>, vector<64x32xbf16>, vector<6x32xf32> -> vector<6x32xf32>
    %cst_20 = arith.constant dense<0.000000e+00> : vector<6x32xf32>
    %74 = tpu.matmul %69, %72, %cst_20 {dimension_numbers = #tpu.dot_dimension_numbers<[1], [0], [0], [1], [0, 0, 1, 1], [], []>} : vector<6x64xbf16>, vector<64x32xbf16>, vector<6x32xf32> -> vector<6x32xf32>
    %cst_21 = arith.constant dense<0.000000e+00> : vector<6x32xf32>
    %75 = tpu.matmul %70, %71, %cst_21 {dimension_numbers = #tpu.dot_dimension_numbers<[1], [0], [0], [1], [0, 0, 1, 1], [], []>} : vector<6x64xbf16>, vector<64x32xbf16>, vector<6x32xf32> -> vector<6x32xf32>
    %cst_22 = arith.constant dense<0.000000e+00> : vector<6x32xf32>
    %76 = tpu.matmul %70, %72, %cst_22 {dimension_numbers = #tpu.dot_dimension_numbers<[1], [0], [0], [1], [0, 0, 1, 1], [], []>} : vector<6x64xbf16>, vector<64x32xbf16>, vector<6x32xf32> -> vector<6x32xf32>
    %77 = arith.addf %73, %76 : vector<6x32xf32>
    %c0_23 = arith.constant 0 : index
    %c0_24 = arith.constant 0 : index
    %78 = vector.load %arg7[%c0_23, %c0_24] : memref<1x32xf32, #tpu.memory_space<vmem>>, vector<1x32xf32>
    %79 = vector.broadcast %78 : vector<1x32xf32> to vector<6x32xf32>
    %80 = arith.addf %77, %79 : vector<6x32xf32>
    %cst_25 = arith.constant 0.000000e+00 : f32
    %81 = vector.broadcast %cst_25 : f32 to vector<6x32xf32>
    %82 = arith.maximumf %80, %81 : vector<6x32xf32>
    %83 = arith.addf %75, %74 : vector<6x32xf32>
    %c0_26 = arith.constant 0 : index
    %c0_27 = arith.constant 0 : index
    %84 = vector.load %arg7[%c0_26, %c0_27] : memref<1x32xf32, #tpu.memory_space<vmem>>, vector<1x32xf32>
    %85 = vector.broadcast %84 : vector<1x32xf32> to vector<6x32xf32>
    %86 = arith.addf %83, %85 : vector<6x32xf32>
    %cst_28 = arith.constant 0.000000e+00 : f32
    %87 = vector.broadcast %cst_28 : f32 to vector<6x32xf32>
    %88 = arith.maximumf %86, %87 : vector<6x32xf32>
    %89 = arith.truncf %68 : vector<6x32xf32> to vector<6x32xbf16>
    %c0_29 = arith.constant 0 : index
    %c0_30 = arith.constant 0 : index
    %90 = vector.load %arg8[%c0_29, %c0_30] : memref<32x100xbf16, #tpu.memory_space<vmem>>, vector<32x100xbf16>
    %cst_31 = arith.constant dense<0.000000e+00> : vector<6x100xf32>
    %91 = tpu.matmul %89, %90, %cst_31 {dimension_numbers = #tpu.dot_dimension_numbers<[1], [0], [0], [1], [0, 0, 1, 1], [], []>} : vector<6x32xbf16>, vector<32x100xbf16>, vector<6x100xf32> -> vector<6x100xf32>
    %c0_32 = arith.constant 0 : index
    %c0_33 = arith.constant 0 : index
    %92 = vector.load %arg9[%c0_32, %c0_33] : memref<32x100xbf16, #tpu.memory_space<vmem>>, vector<32x100xbf16>
    %93 = arith.truncf %82 : vector<6x32xf32> to vector<6x32xbf16>
    %cst_34 = arith.constant dense<0.000000e+00> : vector<6x100xf32>
    %94 = tpu.matmul %93, %92, %cst_34 {dimension_numbers = #tpu.dot_dimension_numbers<[1], [0], [0], [1], [0, 0, 1, 1], [], []>} : vector<6x32xbf16>, vector<32x100xbf16>, vector<6x100xf32> -> vector<6x100xf32>
    %95 = arith.addf %91, %94 : vector<6x100xf32>
    %c0_35 = arith.constant 0 : index
    %c0_36 = arith.constant 0 : index
    %96 = vector.load %arg10[%c0_35, %c0_36] : memref<1x100xf32, #tpu.memory_space<vmem>>, vector<1x100xf32>
    %97 = vector.broadcast %96 : vector<1x100xf32> to vector<6x100xf32>
    %98 = arith.addf %95, %97 : vector<6x100xf32>
    %cst_37 = arith.constant 0.000000e+00 : f32
    %99 = vector.broadcast %cst_37 : f32 to vector<6x100xf32>
    %100 = arith.maximumf %98, %99 : vector<6x100xf32>
    %101 = arith.truncf %88 : vector<6x32xf32> to vector<6x32xbf16>
    %cst_38 = arith.constant dense<0.000000e+00> : vector<6x100xf32>
    %102 = tpu.matmul %101, %92, %cst_38 {dimension_numbers = #tpu.dot_dimension_numbers<[1], [0], [0], [1], [0, 0, 1, 1], [], []>} : vector<6x32xbf16>, vector<32x100xbf16>, vector<6x100xf32> -> vector<6x100xf32>
    %103 = arith.addf %91, %102 : vector<6x100xf32>
    %c0_39 = arith.constant 0 : index
    %c0_40 = arith.constant 0 : index
    %104 = vector.load %arg10[%c0_39, %c0_40] : memref<1x100xf32, #tpu.memory_space<vmem>>, vector<1x100xf32>
    %105 = vector.broadcast %104 : vector<1x100xf32> to vector<6x100xf32>
    %106 = arith.addf %103, %105 : vector<6x100xf32>
    %cst_41 = arith.constant 0.000000e+00 : f32
    %107 = vector.broadcast %cst_41 : f32 to vector<6x100xf32>
    %108 = arith.maximumf %106, %107 : vector<6x100xf32>
    %c0_42 = arith.constant 0 : index
    %c0_43 = arith.constant 0 : index
    %109 = vector.load %arg11[%c0_42, %c0_43] : memref<100x2xbf16, #tpu.memory_space<vmem>>, vector<100x2xbf16>
    %110 = arith.truncf %100 : vector<6x100xf32> to vector<6x100xbf16>
    %cst_44 = arith.constant dense<0.000000e+00> : vector<6x2xf32>
    %111 = tpu.matmul %110, %109, %cst_44 {dimension_numbers = #tpu.dot_dimension_numbers<[1], [0], [0], [1], [0, 0, 1, 1], [], []>} : vector<6x100xbf16>, vector<100x2xbf16>, vector<6x2xf32> -> vector<6x2xf32>
    %c0_45 = arith.constant 0 : index
    %c0_46 = arith.constant 0 : index
    %112 = vector.load %arg12[%c0_45, %c0_46] : memref<1x2xf32, #tpu.memory_space<vmem>>, vector<1x2xf32>
    %113 = vector.broadcast %112 : vector<1x2xf32> to vector<6x2xf32>
    %114 = arith.addf %111, %113 : vector<6x2xf32>
    %115 = arith.truncf %108 : vector<6x100xf32> to vector<6x100xbf16>
    %cst_47 = arith.constant dense<0.000000e+00> : vector<6x2xf32>
    %116 = tpu.matmul %115, %109, %cst_47 {dimension_numbers = #tpu.dot_dimension_numbers<[1], [0], [0], [1], [0, 0, 1, 1], [], []>} : vector<6x100xbf16>, vector<100x2xbf16>, vector<6x2xf32> -> vector<6x2xf32>
    %c0_48 = arith.constant 0 : index
    %c0_49 = arith.constant 0 : index
    %117 = vector.load %arg12[%c0_48, %c0_49] : memref<1x2xf32, #tpu.memory_space<vmem>>, vector<1x2xf32>
    %118 = vector.broadcast %117 : vector<1x2xf32> to vector<6x2xf32>
    %119 = arith.addf %116, %118 : vector<6x2xf32>
    %120 = vector.shape_cast %114 : vector<6x2xf32> to vector<1x6x2xf32>
    %c0_50 = arith.constant 0 : index
    %c0_51 = arith.constant 0 : index
    %c0_52 = arith.constant 0 : index
    %121 = vector.load %arg13[%c0_50, %c0_51, %c0_52] : memref<2x6x2xf32, #tpu.memory_space<vmem>>, vector<1x6x2xf32>
    tpu.vector_store %arg13[%c0_50, %c0_51, %c0_52], %120 {strides = array<i32>} : memref<2x6x2xf32, #tpu.memory_space<vmem>>, vector<1x6x2xf32>,
    %122 = vector.shape_cast %119 : vector<6x2xf32> to vector<1x6x2xf32>
    %c1 = arith.constant 1 : index
    %c0_53 = arith.constant 0 : index
    %c0_54 = arith.constant 0 : index
    %123 = vector.load %arg13[%c1, %c0_53, %c0_54] : memref<2x6x2xf32, #tpu.memory_space<vmem>>, vector<1x6x2xf32>
    tpu.vector_store %arg13[%c1, %c0_53, %c0_54], %122 {strides = array<i32>} : memref<2x6x2xf32, #tpu.memory_space<vmem>>, vector<1x6x2xf32>,
    return
  }
  func.func @transform_0(%arg0: i32) -> (i32, i32) {
    %c0_i32 = arith.constant 0 : i32
    %c0_i32_0 = arith.constant 0 : i32
    %c0_i32_1 = arith.constant 0 : i32
    return %c0_i32, %c0_i32_0 : i32, i32
  }
  func.func @transform_1(%arg0: i32) -> (i32, i32) {
    %c0_i32 = arith.constant 0 : i32
    %c0_i32_0 = arith.constant 0 : i32
    %c0_i32_1 = arith.constant 0 : i32
    return %c0_i32, %c0_i32_0 : i32, i32
  }
  func.func @transform_2(%arg0: i32) -> (i32, i32) {
    %c0_i32 = arith.constant 0 : i32
    %c0_i32_0 = arith.constant 0 : i32
    %c0_i32_1 = arith.constant 0 : i32
    return %c0_i32, %c0_i32_0 : i32, i32
  }
  func.func @transform_3(%arg0: i32) -> (i32, i32) {
    %c0_i32 = arith.constant 0 : i32
    %c0_i32_0 = arith.constant 0 : i32
    %c0_i32_1 = arith.constant 0 : i32
    return %c0_i32, %c0_i32_0 : i32, i32
  }
  func.func @transform_4(%arg0: i32) -> (i32, i32) {
    %c0_i32 = arith.constant 0 : i32
    %c0_i32_0 = arith.constant 0 : i32
    %c0_i32_1 = arith.constant 0 : i32
    return %c0_i32, %c0_i32_0 : i32, i32
  }
  func.func @transform_5(%arg0: i32) -> (i32, i32) {
    %c0_i32 = arith.constant 0 : i32
    %c0_i32_0 = arith.constant 0 : i32
    %c0_i32_1 = arith.constant 0 : i32
    return %c0_i32, %c0_i32_0 : i32, i32
  }
  func.func @transform_6(%arg0: i32) -> (i32, i32) {
    %c0_i32 = arith.constant 0 : i32
    %c0_i32_0 = arith.constant 0 : i32
    %c0_i32_1 = arith.constant 0 : i32
    return %c0_i32, %c0_i32_0 : i32, i32
  }
  func.func @transform_7(%arg0: i32) -> (i32, i32) {
    %c0_i32 = arith.constant 0 : i32
    %c0_i32_0 = arith.constant 0 : i32
    %c0_i32_1 = arith.constant 0 : i32
    return %c0_i32, %c0_i32_0 : i32, i32
  }
  func.func @transform_8(%arg0: i32) -> (i32, i32) {
    %c0_i32 = arith.constant 0 : i32
    %c0_i32_0 = arith.constant 0 : i32
    %c0_i32_1 = arith.constant 0 : i32
    return %c0_i32, %c0_i32_0 : i32, i32
  }
  func.func @transform_9(%arg0: i32) -> (i32, i32) {
    %c0_i32 = arith.constant 0 : i32
    %c0_i32_0 = arith.constant 0 : i32
    %c0_i32_1 = arith.constant 0 : i32
    return %c0_i32, %c0_i32_0 : i32, i32
  }
  func.func @transform_10(%arg0: i32) -> (i32, i32) {
    %c0_i32 = arith.constant 0 : i32
    %c0_i32_0 = arith.constant 0 : i32
    %c0_i32_1 = arith.constant 0 : i32
    return %c0_i32, %c0_i32_0 : i32, i32
  }
  func.func @transform_11(%arg0: i32) -> (i32, i32) {
    %c0_i32 = arith.constant 0 : i32
    %c0_i32_0 = arith.constant 0 : i32
    %c0_i32_1 = arith.constant 0 : i32
    return %c0_i32, %c0_i32_0 : i32, i32
  }
  func.func @transform_12(%arg0: i32) -> (i32, i32, i32) {
    %c0_i32 = arith.constant 0 : i32
    %c0_i32_0 = arith.constant 0 : i32
    %c0_i32_1 = arith.constant 0 : i32
    %c0_i32_2 = arith.constant 0 : i32
    return %c0_i32, %c0_i32_0, %c0_i32_1 : i32, i32, i32
  }
}

module attributes {stable_mosaic.version = 11 : i64} {
  func.func @_backbone_kernel(%arg0: i32, %arg1: memref<1x4x256xbf16, #tpu.memory_space<vmem>>, %arg2: memref<16x4xbf16, #tpu.memory_space<vmem>>, %arg3: memref<16x1xf32, #tpu.memory_space<vmem>>, %arg4: memref<64x16xbf16, #tpu.memory_space<vmem>>, %arg5: memref<64x1xf32, #tpu.memory_space<vmem>>, %arg6: memref<1x64x1xf32, #tpu.memory_space<vmem>>) attributes {dimension_semantics = [#tpu.dimension_semantics<parallel>], iteration_bounds = array<i64: 10>, scalar_prefetch = 0 : i64, scratch_operands = 0 : i64, tpu.core_type = #tpu.core_type<tc>, window_params = [{transform_indices = @transform_0, window_bounds = array<i64: 1, 4, 256>}, {pipeline_mode = #tpu.pipeline_mode<synchronous>, transform_indices = @transform_1, window_bounds = array<i64: 16, 4>}, {pipeline_mode = #tpu.pipeline_mode<synchronous>, transform_indices = @transform_2, window_bounds = array<i64: 16, 1>}, {pipeline_mode = #tpu.pipeline_mode<synchronous>, transform_indices = @transform_3, window_bounds = array<i64: 64, 16>}, {pipeline_mode = #tpu.pipeline_mode<synchronous>, transform_indices = @transform_4, window_bounds = array<i64: 64, 1>}, {transform_indices = @transform_5, window_bounds = array<i64: 1, 64, 1>}]} {
    %c0 = arith.constant 0 : index
    %c0_0 = arith.constant 0 : index
    %c0_1 = arith.constant 0 : index
    %0 = vector.load %arg1[%c0, %c0_0, %c0_1] : memref<1x4x256xbf16, #tpu.memory_space<vmem>>, vector<1x4x256xbf16>
    %1 = vector.shape_cast %0 : vector<1x4x256xbf16> to vector<4x256xbf16>
    %c0_2 = arith.constant 0 : index
    %c0_3 = arith.constant 0 : index
    %2 = vector.load %arg2[%c0_2, %c0_3] : memref<16x4xbf16, #tpu.memory_space<vmem>>, vector<16x4xbf16>
    %cst = arith.constant dense<0.000000e+00> : vector<16x256xf32>
    %3 = tpu.matmul %2, %1, %cst {dimension_numbers = #tpu.dot_dimension_numbers<[1], [0], [0], [1], [0, 0, 1, 1], [], []>} : vector<16x4xbf16>, vector<4x256xbf16>, vector<16x256xf32> -> vector<16x256xf32>
    %c0_4 = arith.constant 0 : index
    %c0_5 = arith.constant 0 : index
    %4 = vector.load %arg3[%c0_4, %c0_5] : memref<16x1xf32, #tpu.memory_space<vmem>>, vector<16x1xf32>
    %5 = vector.broadcast %4 : vector<16x1xf32> to vector<16x256xf32>
    %6 = arith.addf %3, %5 : vector<16x256xf32>
    %cst_6 = arith.constant 0.000000e+00 : f32
    %7 = vector.broadcast %cst_6 : f32 to vector<16x256xf32>
    %8 = arith.maximumf %6, %7 : vector<16x256xf32>
    %cst_7 = arith.constant dense<0.000000e+00> : vector<16xf32>
    %9 = vector.multi_reduction <add>, %8, %cst_7 [1] : vector<16x256xf32> to vector<16xf32>
    %10 = vector.shape_cast %9 : vector<16xf32> to vector<16x1xf32>
    %cst_8 = arith.constant 3.906250e-03 : f32
    %11 = vector.broadcast %cst_8 : f32 to vector<16x1xf32>
    %12 = arith.mulf %10, %11 : vector<16x1xf32>
    %c0_9 = arith.constant 0 : index
    %c0_10 = arith.constant 0 : index
    %13 = vector.load %arg4[%c0_9, %c0_10] : memref<64x16xbf16, #tpu.memory_space<vmem>>, vector<64x16xbf16>
    %14 = arith.truncf %12 : vector<16x1xf32> to vector<16x1xbf16>
    %cst_11 = arith.constant dense<0.000000e+00> : vector<64x1xf32>
    %15 = tpu.matmul %13, %14, %cst_11 {dimension_numbers = #tpu.dot_dimension_numbers<[1], [0], [0], [1], [0, 0, 1, 1], [], []>} : vector<64x16xbf16>, vector<16x1xbf16>, vector<64x1xf32> -> vector<64x1xf32>
    %c0_12 = arith.constant 0 : index
    %c0_13 = arith.constant 0 : index
    %16 = vector.load %arg5[%c0_12, %c0_13] : memref<64x1xf32, #tpu.memory_space<vmem>>, vector<64x1xf32>
    %17 = arith.addf %15, %16 : vector<64x1xf32>
    %cst_14 = arith.constant 0.000000e+00 : f32
    %18 = vector.broadcast %cst_14 : f32 to vector<64x1xf32>
    %19 = arith.maximumf %17, %18 : vector<64x1xf32>
    %20 = vector.shape_cast %19 : vector<64x1xf32> to vector<1x64x1xf32>
    %c0_15 = arith.constant 0 : index
    %c0_16 = arith.constant 0 : index
    %c0_17 = arith.constant 0 : index
    %21 = vector.load %arg6[%c0_15, %c0_16, %c0_17] : memref<1x64x1xf32, #tpu.memory_space<vmem>>, vector<1x64x1xf32>
    tpu.vector_store %arg6[%c0_15, %c0_16, %c0_17], %20 {strides = array<i32>} : memref<1x64x1xf32, #tpu.memory_space<vmem>>, vector<1x64x1xf32>,
    return
  }
  func.func @transform_0(%arg0: i32) -> (i32, i32, i32) {
    %c0_i32 = arith.constant 0 : i32
    %c0_i32_0 = arith.constant 0 : i32
    %c0_i32_1 = arith.constant 0 : i32
    return %arg0, %c0_i32, %c0_i32_0 : i32, i32, i32
  }
  func.func @transform_1(%arg0: i32) -> (i32, i32) {
    %c0_i32 = arith.constant 0 : i32
    %c0_i32_0 = arith.constant 0 : i32
    %c0_i32_1 = arith.constant 0 : i32
    return %c0_i32, %c0_i32_0 : i32, i32
  }
  func.func @transform_2(%arg0: i32) -> (i32, i32) {
    %c0_i32 = arith.constant 0 : i32
    %c0_i32_0 = arith.constant 0 : i32
    %c0_i32_1 = arith.constant 0 : i32
    return %c0_i32, %c0_i32_0 : i32, i32
  }
  func.func @transform_3(%arg0: i32) -> (i32, i32) {
    %c0_i32 = arith.constant 0 : i32
    %c0_i32_0 = arith.constant 0 : i32
    %c0_i32_1 = arith.constant 0 : i32
    return %c0_i32, %c0_i32_0 : i32, i32
  }
  func.func @transform_4(%arg0: i32) -> (i32, i32) {
    %c0_i32 = arith.constant 0 : i32
    %c0_i32_0 = arith.constant 0 : i32
    %c0_i32_1 = arith.constant 0 : i32
    return %c0_i32, %c0_i32_0 : i32, i32
  }
  func.func @transform_5(%arg0: i32) -> (i32, i32, i32) {
    %c0_i32 = arith.constant 0 : i32
    %c0_i32_0 = arith.constant 0 : i32
    %c0_i32_1 = arith.constant 0 : i32
    return %arg0, %c0_i32, %c0_i32_0 : i32, i32, i32
  }
}

</mosaic_0001>

<bundles_post_ra>
// kernel: frame_predict_forward.3
= control target key start
LH: loop header
LB: loop body
LE: loop exit
PB: predicated region body
PF: predicated region fallthrough
CT: control target
= control target key end

     0   :  { %v1259_v0 = vmov 0.0   ;;  %vm1260_vm0 = vmmov 0   ;;  %v1261_v9 = vmov 0   ;;  %vm84_vm1 = vcmask 523264   ;;  %s1262_s18 = smov 64   ;;  %s1559_s1 = inlined_call_operand.vmem [shape: bf16[64,128], index: 1, kind: input, shape index: {}]   ;;  %s1560_s2 = inlined_call_operand.vmem [shape: bf16[32,128], index: 2, kind: input, shape index: {}]   ;;  %s1561_s0 = inlined_call_operand.vmem [shape: f32[10,64], index: 0, kind: input, shape index: {}]   ;;  %s1562_s3 = inlined_call_operand.vmem [shape: f32[1,128], index: 3, kind: input, shape index: {}]   ;;  %s1563_s5 = inlined_call_operand.vmem [shape: bf16[64,32], index: 5, kind: input, shape index: {}]   ;;  %s1564_s4 = inlined_call_operand.vmem [shape: bf16[64,32], index: 4, kind: input, shape index: {}]   ;;  %s1565_s8 = inlined_call_operand.vmem [shape: bf16[32,100], index: 8, kind: input, shape index: {}]   ;;  %s1566_s7 = inlined_call_operand.vmem [shape: bf16[32,100], index: 7, kind: input, shape index: {}]   ;;  %s1567_s6 = inlined_call_operand.vmem [shape: f32[1,32], index: 6, kind: input, shape index: {}]   ;;  %s1568_s10 = inlined_call_operand.vmem [shape: bf16[100,2], index: 10, kind: input, shape index: {}]   ;;  %s1569_s9 = inlined_call_operand.vmem [shape: f32[1,100], index: 9, kind: input, shape index: {}]   ;;  %s1570_s11 = inlined_call_operand.vmem [shape: f32[1,2], index: 11, kind: input, shape index: {}]   ;;  %s1571_s12 = inlined_call_operand.vmem [shape: f32[2,6,2], index: 12, kind: output, shape index: {}]  }
   0x1   :  { %1061 = vmatprep.subr.bf16.mxu0 %v1259_v0  ;;  %v1210_v1 = vld [vmem:[%s1559_s1 + $0x18] sm:$0xff]   ;;  %1073 = vmatprep.subr.bf16.mxu1 %v1259_v0  ;;  %v1211_v2 = vld [vmem:[%s1559_s1 + $0x10] sm:$0xff]   ;;  %v1212_v3 = vld [vmem:[%s1560_s2 + $0x8] sm:$0xff]   ;;  %vm144_vm2 = vcmask 261120   ;;  %vm370_vm3 = vcmask 1041408   ;;  %vm372_vm4 = vcmask 1043456  }
   0x2   :  { %1077 = vmatprep.mubr.msk.bf16.mxu1 %vm1260_vm0, %v1259_v0  ;;  %1069 = vmatprep.mubr.msk.bf16.mxu0 %vm1260_vm0, %v1259_v0  ;;  %v1214_v4 = vld [vmem:[%s1560_s2] sm:$0xff]   ;;  %v1213_v5 = vld [vmem:[%s1559_s1 + $0x8] sm:$0xff]   ;;  %vm858_vm5 = vcmask 818176   ;;  %vm949_vm6 = vcmask 13312  }
   0x3   :  { %1062 = vmatpush3.bf16.msra.mxu0 %v1210_v1  ;;  %1074 = vmatpush3.bf16.msra.mxu1 %v1212_v3  ;;  %v1215_v6 = vld [vmem:[%s1559_s1] sm:$0xff]   ;;  %v43_v8 = vld [vmem:[%s1561_s0 + $0x8] sm:$0x3] }
   0x4   :  { %1063 = vmatprep.subr.bf16.mxu0 %v1259_v0  ;;  %1075 = vmatprep.subr.bf16.mxu1 %v1259_v0  ;;  %v42_v7 = vld [vmem:[%s1561_s0] sm:$0xff] }
   0x5   :  { %v1366_v10 = vpack.c.bf16 %v43_v8, %v42_v7  ;;  %v957_v13 = vld [vmem:[%s1562_s3] ss:$0 sm:$0xff]  ;;  %s1263_s3 = smov 32   ;;  %v1216_v7 = vld [vmem:[%s1563_s5 + $0x18] sm:$0xff]   ;;  %v1217_v8 = vld [vmem:[%s1563_s5 + $0x10] sm:$0xff]  }
   0x7   :  { %1064 = vmatpush3.bf16.msra.mxu0 %v1211_v2  ;;  %1076 = vmatpush3.bf16.msra.mxu1 %v1214_v4 }
   0x8   :  { %1065 = vmatprep.subr.bf16.mxu0 %v1259_v0  ;;  %1081 = vmatprep.subr.bf16.mxu1 %v1259_v0 }
   0xa   :  { %1078 = vmatmul.mubr.bf16.vlgmr.msra.gmra.mxu1 %v1261_v9  ;;  %v1218_v9 = vld [vmem:[%s1563_s5 + $0x8] sm:$0xff]  }
   0xb   :  { %1066 = vmatpush3.bf16.msra.mxu0 %v1213_v5  ;;  %1082 = vmatpush3.bf16.msra.mxu1 %v1212_v3 }
   0xc   :  { %1067 = vmatprep.subr.bf16.mxu0 %v1259_v0  ;;  %1085 = vmatprep.mubr.msk.bf16.mxu1 %vm1260_vm0, %v1259_v0 }
   0xd   :  { %1083 = vmatprep.subr.bf16.mxu1 %v1259_v0 }
   0xf   :  { %1068 = vmatpush3.bf16.msra.mxu0 %v1215_v6  ;;  %1084 = vmatpush3.bf16.msra.mxu1 %v1214_v4 }
  0x10   :  { %1089 = vmatprep.subr.bf16.mxu0 %v1259_v0  ;;  %1097 = vmatprep.subr.bf16.mxu1 %v1259_v0 }
  0x12   :  { %1070 = vmatmul.mubr.msk.bf16.vlgmr.msra.gmra.mxu0 %vm84_vm1, %v1366_v10 }
  0x13   :  { %1090 = vmatpush3.bf16.msra.mxu0 %v1212_v3  ;;  %1093 = vmatprep.mubr.msk.bf16.mxu0 %vm1260_vm0, %v1259_v0 }
  0x14   :  { %1091 = vmatprep.subr.bf16.mxu0 %v1259_v0 }
  0x17   :  { %1092 = vmatpush3.bf16.msra.mxu0 %v1214_v4 }
  0x18   :  { %1109 = vmatprep.subr.bf16.mxu0 %v1259_v0 }
  0xca   :  { %v182_v11 = vpop.f32.mrf.mxu1 }
  0xcc   :  { %v1079_v12 = vpop.f32.mrf.mxu1 }
  0xce   :  { %v185_v14 = vpop.f32.mrf.mxu1 }
  0xcf   :  { %v1219_v14 = vld [vmem:[%s1563_s5] sm:$0xff]  }
  0xd0   :  { %v1080_v16 = vpop.f32.mrf.mxu1 }
  0xd1   :  { %v459_v16 = vrot.slane %v1366_v10, 2 }
  0xd2   :  { %v122_v15 = vpop.f32.mrf.mxu0 }
  0xd3   :  { %v1380_v17 = vadd.f32 %v957_v13, %v122_v15  ;;  %v391_v15 = vrot.slane %v1366_v10, 1  ;;  %v1222_v10 = vld [vmem:[%s1564_s4 + $0x8] sm:$0xff]  }
  0xd4   :  { %v1071_v18 = vpop.f32.mrf.mxu0 }
  0xd5   :  { %v188_v19 = vadd.f32 %v182_v11, %v1380_v17  ;;  %v1221_v18 = vld [vmem:[%s1564_s4 + $0x10] sm:$0xff]  }
  0xd6   :  { %v125_v20 = vpop.f32.mrf.mxu0 }
  0xd7   :  { %1235 = vtanh.f32 %v188_v19  ;;  %v965_v23 = vmul.f32 -1.442695, %v188_v19  ;;  %v1223_v19 = vld [vmem:[%s1564_s4] sm:$0xff]  }
  0xd8   :  { %v1072_v21 = vpop.f32.mrf.mxu0 }
  0xd9   :  { %1237 = vpow2.f32 %v965_v23 }
  0xe4   :  { %v1236_v22 = vpop.eup %1235 }
  0xe5   :  { %198 = vrot.lane.b32.xlu0 %v1236_v22, %s1262_s18 }
  0xe6   :  { %v1238_v24 = vpop.eup %1237 }
  0xe7   :  { %v192_v25 = vadd.f32 1.0, %v1238_v24  ;;  %v1474_v24 = vld [vmem:[%s1565_s8 + $0x8] sm:$0xff]  }
  0xe9   :  { %1239 = vrcp.f32 %v192_v25  ;;  %v1479_v25 = vld [vmem:[%s1565_s8] sm:$0xff]  }
  0xf6   :  { %v1240_v26 = vpop.eup %1239 }
  0xf7   :  { %v196_v29 = vmul.f32 0.0, %v1240_v26 }
 0x157   :  { %v199_v27 = vpop.permute.xlu0 %198 }
 0x158   :  { %v201_v28 = vmul.f32 %v1240_v26, %v199_v27  ;;  %v1227_v27 = vld [vmem:[%s1566_s7] sm:$0xff]  }
 0x15a   :  { %203 = vrot.lane.b32.xlu0 %v201_v28, %s1263_s3 }
 0x1cc   :  { %v204_v30 = vpop.permute.xlu0 %203 }
 0x1cd   :  { %v206_v31 = vadd.f32 %v204_v30, %v196_v29 }
 0x1cf   :  { %1241 = vtanh.f32 %v206_v31  ;;  %v272_v50 = vrot.slane %v206_v31, 6 }
 0x1dc   :  { %v1242_v32 = vpop.eup %1241 }
 0x1dd   :  { %209 = vrot.lane.b32.xlu1 %v1242_v32, %s1262_s18 }
 0x24f   :  { %v210_v33 = vpop.permute.xlu1 %209 }
 0x250   :  { %v1386_v34 = vmul.f32 %v1240_v26, %v210_v33  ;;  %v1226_v26 = vld [vmem:[%s1566_s7 + $0x8] sm:$0xff]  }
 0x252   :  { %v213_v35 = vpack.c.bf16 %v1386_v34, %v1386_v34 }
 0x254   :  { %215 = vrot.lane.b32.xlu1 %v213_v35, %s1263_s3 }
 0x2c6   :  { %v216_v36 = vpop.permute.xlu1 %215 }
 0x2c7   :  { %1086 = vmatmul.mubr.msk.bf16.vlgmr.msra.gmra.mxu1 %vm144_vm2, %v216_v36 }
 0x2c8   :  { %1105 = vmatprep.mubr.msk.bf16.mxu1 %vm1260_vm0, %v1259_v0  ;;  %1098 = vmatpush3.bf16.msra.mxu1 %v1216_v7 }
 0x2c9   :  { %1099 = vmatprep.subr.bf16.mxu1 %v1259_v0 }
 0x2cc   :  { %1100 = vmatpush3.bf16.msra.mxu1 %v1217_v8 }
 0x2cd   :  { %1101 = vmatprep.subr.bf16.mxu1 %v1259_v0 }
 0x2d0   :  { %1102 = vmatpush3.bf16.msra.mxu1 %v1218_v9 }
 0x2d1   :  { %1103 = vmatprep.subr.bf16.mxu1 %v1259_v0 }
 0x2d4   :  { %1104 = vmatpush3.bf16.msra.mxu1 %v1219_v14 }
 0x2d5   :  { %1121 = vmatprep.subr.bf16.mxu1 %v1259_v0 }
 0x2d7   :  { %1106 = vmatmul.mubr.msk.bf16.vlgmr.msra.gmra.mxu1 %vm84_vm1, %v391_v15 }
 0x2d8   :  { %1129 = vmatprep.mubr.msk.bf16.mxu1 %vm1260_vm0, %v1259_v0 }
 0x387   :  { %v254_v37 = vpop.f32.mrf.mxu1 }
 0x388   :  { %v261_v38 = vrot.slane %v254_v37, 6 }
 0x389   :  { %v1087_v39 = vpop.f32.mrf.mxu1 }
 0x38a   :  { %v263_v40 = vadd.f32 %v261_v38, %v1380_v17  ;;  %v981_v39 = vld [vmem:[%s1567_s6] ss:$0 sm:$0xff] }
 0x38b   :  { %v257_v41 = vpop.f32.mrf.mxu1 }
 0x38c   :  { %1243 = vtanh.f32 %v263_v40  ;;  %v967_v44 = vmul.f32 -1.442695, %v263_v40 }
 0x38d   :  { %v1088_v42 = vpop.f32.mrf.mxu1 }
 0x38e   :  { %1245 = vpow2.f32 %v967_v44 }
 0x397   :  { %v453_v29 = vpop.f32.mrf.mxu1 }
 0x399   :  { %v1244_v43 = vpop.eup %1243  ;;  %v1107_v31 = vpop.f32.mrf.mxu1 }
 0x39a   :  { %276 = vrot.lane.b32.xlu0 %v1244_v43, %s1262_s18 }
 0x39b   :  { %v1246_v45 = vpop.eup %1245  ;;  %v456_v33 = vpop.f32.mrf.mxu1 }
 0x39c   :  { %v267_v46 = vadd.f32 1.0, %v1246_v45 }
 0x39d   :  { %v1108_v36 = vpop.f32.mrf.mxu1 }
 0x39e   :  { %1247 = vrcp.f32 %v267_v46 }
 0x3ab   :  { %v1248_v47 = vpop.eup %1247 }
 0x3ac   :  { %v274_v51 = vmul.f32 %v1248_v47, %v272_v50 }
 0x40c   :  { %v277_v48 = vpop.permute.xlu0 %276 }
 0x40d   :  { %v279_v49 = vmul.f32 %v1248_v47, %v277_v48 }
 0x40f   :  { %281 = vrot.lane.b32.xlu1 %v279_v49, %s1263_s3 }
 0x481   :  { %v282_v52 = vpop.permute.xlu1 %281 }
 0x482   :  { %v1397_v53 = vadd.f32 %v282_v52, %v274_v51 }
 0x484   :  { %1249 = vtanh.f32 %v1397_v53  ;;  %v351_v20 = vrot.slane %v1397_v53, 6 }
 0x491   :  { %v1250_v54 = vpop.eup %1249 }
 0x492   :  { %287 = vrot.lane.b32.xlu0 %v1250_v54, %s1262_s18 }
 0x504   :  { %v288_v55 = vpop.permute.xlu0 %287 }
 0x505   :  { %v1401_v56 = vmul.f32 %v1248_v47, %v288_v55 }
 0x507   :  { %v291_v57 = vpack.c.bf16 %v1401_v56, %v1401_v56  ;;  %v371_v55 = vsel %vm370_vm3, %v1386_v34, %v1401_v56  ;;  %v1230_v34 = vld [vmem:[%s1568_s10 + $0x20] sm:$0xff]   ;;  %v1231_v56 = vld [vmem:[%s1568_s10 + $0x18] sm:$0xff]  }
 0x509   :  { %v293_v58 = vrot.slane %v291_v57, 1  ;;  %v1228_v57 = vld [vmem:[%s1568_s10 + $0x30] ss:$0 sps:$4 sm:$0x33]  }
 0x50b   :  { %294 = vrot.lane.b32.xlu1 %v293_v58, %s1263_s3 }
 0x57d   :  { %v295_v59 = vpop.permute.xlu1 %294 }
 0x57e   :  { %1094 = vmatmul.mubr.msk.bf16.vlgmr.msra.gmra.mxu0 %vm144_vm2, %v295_v59 }
 0x57f   :  { %1117 = vmatprep.mubr.msk.bf16.mxu0 %vm1260_vm0, %v1259_v0  ;;  %1110 = vmatpush3.bf16.msra.mxu0 %v1216_v7  ;;  %v1233_v7 = vld [vmem:[%s1568_s10 + $0x8] sm:$0xff]  }
 0x580   :  { %1111 = vmatprep.subr.bf16.mxu0 %v1259_v0 }
 0x583   :  { %1112 = vmatpush3.bf16.msra.mxu0 %v1217_v8  ;;  %v1234_v8 = vld [vmem:[%s1568_s10] sm:$0xff]  }
 0x584   :  { %1113 = vmatprep.subr.bf16.mxu0 %v1259_v0 }
 0x587   :  { %1114 = vmatpush3.bf16.msra.mxu0 %v1218_v9 }
 0x588   :  { %1115 = vmatprep.subr.bf16.mxu0 %v1259_v0 }
 0x58b   :  { %1116 = vmatpush3.bf16.msra.mxu0 %v1219_v14 }
 0x58c   :  { %1133 = vmatprep.subr.bf16.mxu0 %v1259_v0 }
 0x58e   :  { %1118 = vmatmul.mubr.msk.bf16.vlgmr.msra.gmra.mxu0 %vm84_vm1, %v459_v16 }
 0x58f   :  { %1141 = vmatprep.mubr.msk.bf16.mxu0 %vm1260_vm0, %v1259_v0 }
 0x63e   :  { %v333_v60 = vpop.f32.mrf.mxu0 }
 0x63f   :  { %v340_v61 = vrot.slane %v333_v60, 4  ;;  %v863_v60 = vsel %vm370_vm3, %v1228_v57, 0 }
 0x640   :  { %v1095_v62 = vpop.f32.mrf.mxu0 }
 0x641   :  { %v342_v63 = vadd.f32 %v340_v61, %v1380_v17  ;;  %v1220_v17 = vld [vmem:[%s1564_s4 + $0x18] sm:$0xff]   ;;  %v1229_v61 = vld [vmem:[%s1568_s10 + $0x28] sm:$0xff]   ;;  %v1232_v62 = vld [vmem:[%s1568_s10 + $0x10] sm:$0xff]  }
 0x642   :  { %v336_v1 = vpop.f32.mrf.mxu0  ;;  %1122 = vmatpush3.bf16.msra.mxu1 %v1220_v17  ;;  %1134 = vmatpush3.bf16.msra.mxu0 %v1220_v17 }
 0x643   :  { %1251 = vtanh.f32 %v342_v63  ;;  %v969_v4 = vmul.f32 -1.442695, %v342_v63  ;;  %1123 = vmatprep.subr.bf16.mxu1 %v1259_v0  ;;  %1135 = vmatprep.subr.bf16.mxu0 %v1259_v0 }
 0x644   :  { %v1096_v2 = vpop.f32.mrf.mxu0 }
 0x645   :  { %1253 = vpow2.f32 %v969_v4 }
 0x646   :  { %1124 = vmatpush3.bf16.msra.mxu1 %v1221_v18  ;;  %1136 = vmatpush3.bf16.msra.mxu0 %v1221_v18 }
 0x647   :  { %1125 = vmatprep.subr.bf16.mxu1 %v1259_v0  ;;  %1137 = vmatprep.subr.bf16.mxu0 %v1259_v0 }
 0x64a   :  { %1126 = vmatpush3.bf16.msra.mxu1 %v1222_v10  ;;  %1138 = vmatpush3.bf16.msra.mxu0 %v1222_v10 }
 0x64b   :  { %1127 = vmatprep.subr.bf16.mxu1 %v1259_v0  ;;  %1139 = vmatprep.subr.bf16.mxu0 %v1259_v0 }
 0x64e   :  { %1128 = vmatpush3.bf16.msra.mxu1 %v1223_v19  ;;  %1140 = vmatpush3.bf16.msra.mxu0 %v1223_v19  ;;  %v497_v30 = vpop.f32.mrf.mxu0 }
 0x64f   :  { %1153 = vmatprep.subr.bf16.mxu0 %v1259_v0  ;;  %1145 = vmatprep.subr.bf16.mxu1 %v1259_v0 }
 0x650   :  { %v1252_v3 = vpop.eup %1251  ;;  %v1119_v32 = vpop.f32.mrf.mxu0 }
 0x651   :  { %355 = vrot.lane.b32.xlu0 %v1252_v3, %s1262_s18  ;;  %1130 = vmatmul.mubr.msk.bf16.vlgmr.msra.gmra.mxu1 %vm84_vm1, %v391_v15 }
 0x652   :  { %v1254_v5 = vpop.eup %1253  ;;  %1142 = vmatmul.mubr.msk.bf16.vlgmr.msra.gmra.mxu0 %vm84_vm1, %v459_v16  ;;  %1149 = vmatprep.mubr.msk.bf16.mxu1 %vm1260_vm0, %v1259_v0  ;;  %v500_v35 = vpop.f32.mrf.mxu0 }
 0x653   :  { %v346_v6 = vadd.f32 1.0, %v1254_v5  ;;  %1157 = vmatprep.mubr.msk.bf16.mxu0 %vm1260_vm0, %v1259_v0  ;;  %1154 = vmatpush3.bf16.msra.mxu0 %v1474_v24 }
 0x654   :  { %1155 = vmatprep.subr.bf16.mxu0 %v1259_v0  ;;  %1146 = vmatpush3.bf16.msra.mxu1 %v1226_v26  ;;  %v1120_v37 = vpop.f32.mrf.mxu0 }
 0x655   :  { %1255 = vrcp.f32 %v346_v6  ;;  %1147 = vmatprep.subr.bf16.mxu1 %v1259_v0 }
 0x657   :  { %1156 = vmatpush3.bf16.msra.mxu0 %v1479_v25 }
 0x658   :  { %1169 = vmatprep.subr.bf16.mxu0 %v1259_v0  ;;  %1148 = vmatpush3.bf16.msra.mxu1 %v1227_v27 }
 0x659   :  { %1161 = vmatprep.subr.bf16.mxu1 %v1259_v0 }
 0x662   :  { %v1422_v11 = vpop.eup %1255 }
 0x663   :  { %v353_v21 = vmul.f32 %v1422_v11, %v351_v20 }
 0x6c3   :  { %v356_v12 = vpop.permute.xlu0 %355 }
 0x6c4   :  { %v358_v13 = vmul.f32 %v1422_v11, %v356_v12 }
 0x6c6   :  { %360 = vrot.lane.b32.xlu1 %v358_v13, %s1263_s3 }
 0x711   :  { %v561_v38 = vpop.f32.mrf.mxu1 }
 0x712   :  { %v610_v40 = vpop.f32.mrf.mxu0  ;;  %v562_v41 = vadd.f32 %v561_v38, %v497_v30 }
 0x713   :  { %v611_v42 = vadd.f32 %v610_v40, %v453_v29  ;;  %v1131_v43 = vpop.f32.mrf.mxu1 }
 0x714   :  { %v1143_v44 = vpop.f32.mrf.mxu0  ;;  %v574_v45 = vadd.f32 %v981_v39, %v562_v41 }
 0x715   :  { %v616_v46 = vadd.f32 %v981_v39, %v611_v42  ;;  %v564_v47 = vpop.f32.mrf.mxu1 }
 0x716   :  { %v613_v48 = vpop.f32.mrf.mxu0  ;;  %v575_v49 = vmax.f32 %v574_v45, 0.0 }
 0x717   :  { %v1132_v50 = vpop.f32.mrf.mxu1  ;;  %v617_v1 = vmax.f32 %v616_v46, 0.0 }
 0x718   :  { %v1144_v51 = vpop.f32.mrf.mxu0  ;;  %v685_v52 = vpack.c.bf16 %v575_v49, %v575_v49 }
 0x719   :  { %v751_v2 = vpack.c.bf16 %v617_v1, %v617_v1 }
 0x71a   :  { %1158 = vmatmul.mubr.msk.bf16.vlgmr.msra.gmra.mxu0 %vm144_vm2, %v685_v52 }
 0x71b   :  { %1183 = vmatprep.mubr.msk.bf16.mxu0 %vm1260_vm0, %v1259_v0  ;;  %1170 = vmatpush3.bf16.msra.mxu0 %v863_v60 }
 0x71c   :  { %1171 = vmatprep.subr.bf16.mxu0 %v1259_v0 }
 0x71f   :  { %1172 = vmatpush3.bf16.msra.mxu0 %v1229_v61 }
 0x720   :  { %1173 = vmatprep.subr.bf16.mxu0 %v1259_v0 }
 0x723   :  { %1174 = vmatpush3.bf16.msra.mxu0 %v1230_v34 }
 0x724   :  { %1175 = vmatprep.subr.bf16.mxu0 %v1259_v0 }
 0x727   :  { %1176 = vmatpush3.bf16.msra.mxu0 %v1231_v56 }
 0x728   :  { %1177 = vmatprep.subr.bf16.mxu0 %v1259_v0 }
 0x72b   :  { %1178 = vmatpush3.bf16.msra.mxu0 %v1232_v62 }
 0x72c   :  { %1179 = vmatprep.subr.bf16.mxu0 %v1259_v0 }
 0x72f   :  { %1180 = vmatpush3.bf16.msra.mxu0 %v1233_v7 }
 0x730   :  { %1181 = vmatprep.subr.bf16.mxu0 %v1259_v0 }
 0x733   :  { %1182 = vmatpush3.bf16.msra.mxu0 %v1234_v8 }
 0x738   :  { %v361_v22 = vpop.permute.xlu1 %360 }
 0x739   :  { %v363_v23 = vadd.f32 %v361_v22, %v353_v21 }
 0x73b   :  { %1257 = vtanh.f32 %v363_v23 }
 0x748   :  { %v1258_v28 = vpop.eup %1257 }
 0x749   :  { %366 = vrot.lane.b32.xlu0 %v1258_v28, %s1262_s18 }
 0x7bb   :  { %v367_v53 = vpop.permute.xlu0 %366 }
 0x7bc   :  { %v369_v54 = vmul.f32 %v1422_v11, %v367_v53  ;;  %v989_v11 = vld [vmem:[%s1569_s9] ss:$0 sm:$0xff] }
 0x7be   :  { %v373_v58 = vsel %vm372_vm4, %v371_v55, %v369_v54 }
 0x7bf   :  { %v618_v59 = vpack.c.bf16 %v373_v58, %v373_v58 }
 0x7c1   :  { %624 = vrot.lane.b32.xlu1 %v618_v59, %s1263_s3 }
 0x7da   :  { %v735_v3 = vpop.f32.mrf.mxu0 }
 0x7dc   :  { %v1159_v4 = vpop.f32.mrf.mxu0 }
 0x7de   :  { %v738_v5 = vpop.f32.mrf.mxu0 }
 0x7e0   :  { %v1160_v6 = vpop.f32.mrf.mxu0 }
 0x833   :  { %v625_v63 = vpop.permute.xlu1 %624 }
 0x834   :  { %1150 = vmatmul.mubr.msk.bf16.vlgmr.msra.gmra.mxu1 %vm144_vm2, %v625_v63 }
 0x835   :  { %1162 = vmatpush3.bf16.msra.mxu1 %v1474_v24  ;;  %1165 = vmatprep.mubr.msk.bf16.mxu1 %vm1260_vm0, %v1259_v0 }
 0x836   :  { %1163 = vmatprep.subr.bf16.mxu1 %v1259_v0 }
 0x839   :  { %1164 = vmatpush3.bf16.msra.mxu1 %v1479_v25  ;;  %v991_v25 = vld [vmem:[%s1570_s11] ss:$0 sm:$0xff] }
 0x83a   :  { %1187 = vmatprep.subr.bf16.mxu1 %v1259_v0 }
 0x83c   :  { %1166 = vmatmul.mubr.msk.bf16.vlgmr.msra.gmra.mxu1 %vm144_vm2, %v751_v2 }
 0x83d   :  { %1188 = vmatpush3.bf16.msra.mxu1 %v863_v60  ;;  %1201 = vmatprep.mubr.msk.bf16.mxu1 %vm1260_vm0, %v1259_v0 }
 0x83e   :  { %1189 = vmatprep.subr.bf16.mxu1 %v1259_v0 }
 0x841   :  { %1190 = vmatpush3.bf16.msra.mxu1 %v1229_v61 }
 0x842   :  { %1191 = vmatprep.subr.bf16.mxu1 %v1259_v0 }
 0x845   :  { %1192 = vmatpush3.bf16.msra.mxu1 %v1230_v34 }
 0x846   :  { %1193 = vmatprep.subr.bf16.mxu1 %v1259_v0 }
 0x849   :  { %1194 = vmatpush3.bf16.msra.mxu1 %v1231_v56 }
 0x84a   :  { %1195 = vmatprep.subr.bf16.mxu1 %v1259_v0 }
 0x84d   :  { %1196 = vmatpush3.bf16.msra.mxu1 %v1232_v62 }
 0x84e   :  { %1197 = vmatprep.subr.bf16.mxu1 %v1259_v0 }
 0x851   :  { %1198 = vmatpush3.bf16.msra.mxu1 %v1233_v7 }
 0x852   :  { %1199 = vmatprep.subr.bf16.mxu1 %v1259_v0 }
 0x855   :  { %1200 = vmatpush3.bf16.msra.mxu1 %v1234_v8 }
 0x8f4   :  { %v675_v9 = vpop.f32.mrf.mxu1 }
 0x8f5   :  { %v741_v12 = vadd.f32 %v735_v3, %v675_v9 }
 0x8f6   :  { %v1151_v13 = vpop.f32.mrf.mxu1 }
 0x8f7   :  { %v749_v14 = vadd.f32 %v989_v11, %v741_v12 }
 0x8f8   :  { %v678_v15 = vpop.f32.mrf.mxu1 }
 0x8f9   :  { %v750_v16 = vmax.f32 %v749_v14, 0.0 }
 0x8fa   :  { %v1152_v17 = vpop.f32.mrf.mxu1 }
 0x8fb   :  { %v811_v18 = vpack.c.bf16 %v750_v16, %v750_v16 }
 0x8fc   :  { %v789_v0 = vpop.f32.mrf.mxu1 }
 0x8fd   :  { %v795_v10 = vadd.f32 %v789_v0, %v675_v9  ;;  %1184 = vmatmul.mubr.msk.bf16.vlgmr.msra.gmra.mxu0 %vm858_vm5, %v811_v18 }
 0x8fe   :  { %v1167_v19 = vpop.f32.mrf.mxu1 }
 0x8ff   :  { %v796_v20 = vadd.f32 %v989_v11, %v795_v10 }
 0x900   :  { %v792_v21 = vpop.f32.mrf.mxu1 }
 0x901   :  { %v797_v22 = vmax.f32 %v796_v20, 0.0 }
 0x902   :  { %v1168_v23 = vpop.f32.mrf.mxu1 }
 0x903   :  { %v905_v24 = vpack.c.bf16 %v797_v22, %v797_v22 }
 0x905   :  { %1202 = vmatmul.mubr.msk.bf16.vlgmr.msra.gmra.mxu1 %vm858_vm5, %v905_v24 }
 0x9bd   :  { %v899_v26 = vpop.f32.mrf.mxu0 }
 0x9be   :  { %v900_v27 = vadd.f32 %v991_v25, %v899_v26 }
 0x9bf   :  { %v1185_v28 = vpop.f32.mrf.mxu0 }
 0x9c0   :  { %950 = vst.msk [vmem:[%s1571_s12] sm:$0x3f] %vm949_vm6, %v900_v27 }
 0x9c1   :  { %v902_v29 = vpop.f32.mrf.mxu0 }
 0x9c3   :  { %v1186_v30 = vpop.f32.mrf.mxu0 }
 0x9c5   :  { %v943_v31 = vpop.f32.mrf.mxu1 }
 0x9c6   :  { %v944_v32 = vadd.f32 %v991_v25, %v943_v31 }
 0x9c7   :  { %v1203_v33 = vpop.f32.mrf.mxu1 }
 0x9c8   :  { %1001 = vst.msk [vmem:[%s1571_s12 + $0x8] sm:$0x3f] %vm949_vm6, %v944_v32 }
 0x9c9   :  { %v946_v35 = vpop.f32.mrf.mxu1 }
 0x9cb   :  { %v1204_v36 = vpop.f32.mrf.mxu1 }

// kernel: frame_predict_forward.2
= control target key start
LH: loop header
LB: loop body
LE: loop exit
PB: predicated region body
PF: predicated region fallthrough
CT: control target
= control target key end

     0   :  { %s602_s18 = smov 0   ;;  %s686_s0 = inlined_call_operand.vmem [shape: bf16[10,4,256], index: 0, kind: input, shape index: {}]   ;;  %s687_s1 = inlined_call_operand.vmem [shape: bf16[16,4], index: 1, kind: input, shape index: {}]   ;;  %s688_s2 = inlined_call_operand.vmem [shape: f32[16,1], index: 2, kind: input, shape index: {}]   ;;  %s689_s3 = inlined_call_operand.vmem [shape: bf16[64,16], index: 3, kind: input, shape index: {}]   ;;  %s690_s4 = inlined_call_operand.vmem [shape: f32[64,1], index: 4, kind: input, shape index: {}]   ;;  %s691_s5 = inlined_call_operand.vmem [shape: f32[10,64,1], index: 5, kind: output, shape index: {}]  }
   0x1 LB: > { %s508_s19 = sadd.s32 4294967295, %s569_s18   ;;  %p512_p0 = scmp.ge.s32.totalorder %s569_s18, 1  ;;  %s569_s18 = sphi %s602_s18, %s15_s18  }
   0x2   : > { %p187_p1 = scmp.lt.s32.totalorder %s569_s18, 11 }
   0x4   : > { %p188_p2 = pnand %p512_p0, %p187_p1 }
   0x5   : > { %p215_p3 = scmp.lt.s32.totalorder (!%p188_p2), %s508_s19, 9 }
   0x6   : > { %191 = sbr.rel (%p188_p2) target bundleno = 584 (0x248), region = 40 }
   0xb   : > { %v571_v0 = vmov 0   ;;  %v229_v1 = vld [vmem:[%s688_s2] sm:$0xff]  ;;  %s693_s19 = smov (!%p215_p3, %s508_s19), 9  ;;  %v230_v2 = vld [vmem:[%s688_s2 + $0x8] sm:$0xff]  ;;  %vm259_vm0 = vcmask 1041408   ;;  %vm255_vm1 = vcmask 31744  }
   0xc   : > { %298 = vmatprep.mubr.bf16.mxu0 %v571_v0  ;;  %557 = vset.pattern.permute.xlu0 %v571_v0  ;;  %s531_s24 = sshll.u32 %s693_s19, 2  ;;  %v558_v6 = vld [vmem:[%s687_s1] sm:$0xff]   ;;  %vm358_vm2 = vcmask 130048   ;;  %v560_v29 = vld [vmem:[%s689_s3 + $0x8] sm:$0xff]   ;;  %v561_v30 = vld [vmem:[%s689_s3 + $0x10] sm:$0xff]   ;;  %s532_s15 = sshll.u32 %s693_s19, 6 }
   0xd   : > { %233 = vperm.xlu0 %557, %v229_v1   ;;  %s219_s27 = scalar_lea.vmem %s686_s0, %s531_s24  ;;  %v559_v23 = vld [vmem:[%s689_s3] sm:$0xff]   ;;  %v562_v31 = vld [vmem:[%s689_s3 + $0x18] sm:$0xff]   ;;  %v332_v32 = vld [vmem:[%s690_s4 + $0x10] sm:$0xff]  ;;  %s647_s22 = scalar_lea.vmem %s691_s5, %s532_s15  ;;  %vm444_vm3 = vcmask 7168  }
   0xe   : > { %v518_v3 = vld.sshfl [vmem:[%s219_s27] sm:$0x33 pattern:$0x76325410]  ;;  %540 = vmatprep.mubr.msk.bf16.mxu1 %vm358_vm2, %v559_v23  ;;  %v333_v37 = vld [vmem:[%s690_s4 + $0x18] sm:$0xff]  ;;  %v331_v41 = vld [vmem:[%s690_s4 + $0x8] sm:$0xff] }
   0xf   : > { %v254_v4 = vcombine.high %v518_v3, %v518_v3  ;;  %v261_v5 = vsel %vm259_vm0, %v518_v3, 0  ;;  %v330_v34 = vld [vmem:[%s690_s4] sm:$0xff]  ;;  %v336_v45 = vld [vmem:[%s690_s4 + $0x30] sm:$0xff]  ;;  %v337_v53 = vld [vmem:[%s690_s4 + $0x38] sm:$0xff] }
  0x10   : > { %v334_v49 = vld [vmem:[%s690_s4 + $0x20] sm:$0xff]  ;;  %v335_v57 = vld [vmem:[%s690_s4 + $0x28] sm:$0xff] }
  0x11   : > { %238 = vperm.xlu0 %557, %v230_v2   ;;  %519 = vmatprep.subr.msk.bf16.mxu0 %vm259_vm0, %v254_v4 }
  0x12   : > { %281 = vmatpush1.bf16.msra.mxu0 %v261_v5 }
  0x15   : > { %520 = vmatmul.mubr.msk.bf16.vlgmr.msra.gmra.mxu0 %vm255_vm1, %v558_v6 }
  0x88   : > { %v234_v7 = vpop.permute.xlu0 %233 }
  0x8c   : > { %v239_v12 = vpop.permute.xlu0 %238 }
  0xd5   : > { %v300_v8 = vpop.f32.mrf.mxu0 }
  0xd6   : > { %v301_v9 = vadd.f32 %v300_v8, %v234_v7 }
  0xd7   : > { %v302_v10 = vpop.f32.mrf.mxu0 }
  0xd8   : > { %v303_v11 = vadd.f32 %v302_v10, %v234_v7  ;;  %v309_v14 = vmax.f32 %v301_v9, 0.0 }
  0xd9   : > { %v304_v13 = vpop.f32.mrf.mxu0 }
  0xda   : > { %v310_v15 = vmax.f32 %v303_v11, 0.0  ;;  %v305_v16 = vadd.f32 %v304_v13, %v239_v12 }
  0xdb   : > { %v306_v17 = vpop.f32.mrf.mxu0 }
  0xdc   : > { %v307_v18 = vadd.f32 %v306_v17, %v239_v12  ;;  %v313_v19 = vadd.f32 %v310_v15, %v309_v14  ;;  %v311_v20 = vmax.f32 %v305_v16, 0.0 }
  0xde   : > { %v312_v21 = vmax.f32 %v307_v18, 0.0  ;;  %314 = vadd.xlane.f32.xlu1 %v313_v19 }
  0xe0   : > { %v316_v22 = vadd.f32 %v312_v21, %v311_v20 }
  0xe2   : > { %317 = vadd.xlane.f32.xlu1 %v316_v22 }
 0x167   : > { %v315_v24 = vpop.xlane.xlu1 %314 }
 0x168   : > { %v319_v26 = vmul.f32 0.00390625, %v315_v24 }
 0x16b   : > { %v318_v25 = vpop.xlane.xlu1 %317 }
 0x16c   : > { %v320_v27 = vmul.f32 0.00390625, %v318_v25 }
 0x16e   : > { %v329_v28 = vpack.c.bf16 %v320_v27, %v319_v26 }
 0x170   : > { %538 = vmatprep.subr.bf16.mxu1 %v329_v28 }
 0x171   : > { %539 = vmatpush3.bf16.msra.mxu1 %v329_v28 }
 0x174   : > { %541 = vmatmul.mubr.msk.bf16.vlgmr.msra.gmra.mxu1 %vm358_vm2, %v560_v29 }
 0x175   : > { %544 = vmatprep.mubr.msk.bf16.mxu1 %vm358_vm2, %v561_v30 }
 0x17c   : > { %545 = vmatmul.mubr.msk.bf16.gmra.mxu1 %vm358_vm2, %v562_v31 }
 0x234   : > { %v542_v33 = vpop.f32.mrf.mxu1 }
 0x235   : > { %v414_v35 = vadd.f32 %v542_v33, %v332_v32 }
 0x236   : > { %v405_v36 = vpop.f32.mrf.mxu1 }
 0x237   : > { %v438_v38 = vmax.f32 %v414_v35, 0.0  ;;  %v406_v39 = vadd.f32 %v405_v36, %v330_v34 }
 0x238   : > { %v543_v40 = vpop.f32.mrf.mxu1 }
 0x239   : > { %447 = vst.msk [vmem:[%s647_s22 + $0x10] sm:$0xff] %vm444_vm3, %v438_v38  ;;  %v436_v42 = vmax.f32 %v406_v39, 0.0  ;;  %v417_v43 = vadd.f32 %v543_v40, %v333_v37 }
 0x23a   : > { %v408_v44 = vpop.f32.mrf.mxu1 }
 0x23b   : > { %445 = vst.msk [vmem:[%s647_s22] sm:$0xff] %vm444_vm3, %v436_v42  ;;  %v439_v46 = vmax.f32 %v417_v43, 0.0  ;;  %v409_v47 = vadd.f32 %v408_v44, %v331_v41 }
 0x23c   : > { %v546_v48 = vpop.f32.mrf.mxu1 }
 0x23d   : > { %448 = vst.msk [vmem:[%s647_s22 + $0x18] sm:$0xff] %vm444_vm3, %v439_v46  ;;  %v437_v50 = vmax.f32 %v409_v47, 0.0  ;;  %v430_v51 = vadd.f32 %v546_v48, %v336_v45 }
 0x23e   : > { %v421_v52 = vpop.f32.mrf.mxu1 }
 0x23f   : > { %446 = vst.msk [vmem:[%s647_s22 + $0x8] sm:$0xff] %vm444_vm3, %v437_v50  ;;  %v442_v54 = vmax.f32 %v430_v51, 0.0  ;;  %v422_v55 = vadd.f32 %v421_v52, %v334_v49 }
 0x240   : > { %v547_v56 = vpop.f32.mrf.mxu1 }
 0x241   : > { %451 = vst.msk [vmem:[%s647_s22 + $0x30] sm:$0xff] %vm444_vm3, %v442_v54  ;;  %v440_v58 = vmax.f32 %v422_v55, 0.0  ;;  %v433_v59 = vadd.f32 %v547_v56, %v337_v53 }
 0x242   : > { %v424_v60 = vpop.f32.mrf.mxu1 }
 0x243   : > { %449 = vst.msk [vmem:[%s647_s22 + $0x20] sm:$0xff] %vm444_vm3, %v440_v58  ;;  %v443_v61 = vmax.f32 %v433_v59, 0.0  ;;  %v425_v62 = vadd.f32 %v424_v60, %v335_v57 }
 0x245   : > { %452 = vst.msk [vmem:[%s647_s22 + $0x38] sm:$0xff] %vm444_vm3, %v443_v61  ;;  %v441_v63 = vmax.f32 %v425_v62, 0.0 }
 0x247   : > { %450 = vst.msk [vmem:[%s647_s22 + $0x28] sm:$0xff] %vm444_vm3, %v441_v63 }
 0x248 PF: > { %s15_s18 = sadd.s32 1, %s569_s18  }
 0x249   : > { %p12_p4 = scmp.ge.s32.totalorder %s15_s18, 12  }
 0x24b   :  { %14 = sbr.rel (!%p12_p4) target bundleno = 1 (0x1), region = 70 }

</bundles_post_ra>
